<compile_context>
chip_gen: v7x
topology: tpu7x:2x2x1
jax: 0.10.0
libtpu: 0.0.40
codegen_flags: <defaults>
</compile_context>

<pallas_src>
import jax
import jax.numpy as jnp
from jax.experimental import pallas as pl
from jax.experimental.pallas import tpu as pltpu

# ---------------------------------------------------------------------------
# model dimensions (small, consistent with the module's __init__)
# ---------------------------------------------------------------------------
B          = 8    # batch
HUMAN_NUM  = 4    # config_HA.sim.human_num
HUMAN_DIM  = 16   # per-human observation size
SHARED     = 32   # config_model.shared_latent_space
HIDDEN     = 32   # hidden width for HAN / PT embedding MLPs
PT_IN      = 16   # PT_model_params[...].input_size
LOOKBACK   = 4    # config_model.lookback -> past_robot_velocities has 2*LOOKBACK
VEL_DIM    = 2 * LOOKBACK
FUSED_HID  = 64   # config_model.fusing_layers = [64]
FUSED_OUT  = 64   # config_model.size_of_fused_layers
FUSED_IN   = 2 * SHARED + VEL_DIM            # 72

SLAB_W     = 128                             # lane width of every packed slab
HUM_FLAT   = HUMAN_NUM * HUMAN_DIM           # 64  (slab lanes 0..63)
PT_OFF     = HUM_FLAT                        # 64  (slab lanes 64..79)
VEL_OFF    = PT_OFF + PT_IN                  # 80  (slab lanes 80..87)
assert HUMAN_NUM * HIDDEN == SLAB_W          # per-human hidden blocks tile 128 lanes exactly

# ---------------------------------------------------------------------------
# packed-parameter layout (single bf16 weight slab + single f32 bias slab)
# every section row count / offset is a multiple of 16 -> sublane aligned for bf16
# ---------------------------------------------------------------------------
_W_SECS = (
    ("h1",     SLAB_W),     # block-diag per-human layer 1 (reads the full input slab)
    ("h2",     SLAB_W),     # block-diag per-human layer 2
    ("att",    SLAB_W),     # block-diag attention scorer (score replicated per 32-lane block)
    ("ha",     SLAB_W),     # w_ha tiled over humans (attention pooling folded in)
    ("p1",     SLAB_W),     # zero-padded: reads only the PT lanes of the slab
    ("p2",     HIDDEN),
    ("f1_ha",  SHARED),
    ("f1_pt",  SHARED),
    ("f1_vel", SLAB_W),     # zero-padded: reads only the velocity lanes of the slab
    ("f2",     FUSED_HID),
)
_W_OFF = {}
_row = 0
for _name, _rows in _W_SECS:
    _W_OFF[_name] = _row
    _row += _rows
W_ROWS = _row                                # 928

_B_ROW = {"h1": 0, "h2": 1, "att": 2, "ha": 3, "p1": 4, "p2": 5, "f1": 6, "f2": 7}
B_ROWS = 8


# ---------------------------------------------------------------------------
# Pallas kernel: whole forward pass (HAN + PT MLP + fused MLP) in VMEM
# ---------------------------------------------------------------------------
def shared_network_kernel(x_ref, wp_ref, bp_ref, out_ref):
    f32, bf16 = jnp.float32, jnp.bfloat16

    def w(name, rows, cols=SLAB_W):           # static, aligned weight views (bf16)
        o = _W_OFF[name]
        return wp_ref[o:o + rows, :cols]

    def b(name, cols=SLAB_W):                 # static bias views (f32)
        r = _B_ROW[name]
        return bp_ref[r:r + 1, :cols]

    x = x_ref[...]                            # (bm, 128) f32: [humans | pt | vel | 0]
    x_bf = x.astype(bf16)

    # ---- HumanAvoidanceNetwork: per-human MLP via block-diagonal weights ----
    # every intermediate stays a lane-dense (bm, 128) value (human i -> lanes i*32..i*32+31)
    h1 = jnp.maximum(jnp.dot(x_bf, w("h1", SLAB_W), preferred_element_type=f32)
                     + b("h1"), 0.0)
    h2 = jnp.maximum(jnp.dot(h1.astype(bf16), w("h2", SLAB_W), preferred_element_type=f32)
                     + b("h2"), 0.0)

    # attention logits, replicated across each human's 32-lane block
    s = jnp.dot(h2.astype(bf16), w("att", SLAB_W), preferred_element_type=f32) + b("att", 1)
    m = jnp.max(s, axis=-1, keepdims=True)
    e = jnp.exp(s - m)                        # each human's exp() appears HIDDEN times
    inv = pl.reciprocal(jnp.sum(e, axis=-1, keepdims=True), approx=True)   # 1/(HIDDEN*denom)
    att = e * (inv * float(HIDDEN))           # per-lane softmax weight
    weighted = att * h2                       # (bm, 128)
    # pooling over humans is folded into the tiled w_ha matmul
    ha = jnp.dot(weighted.astype(bf16), w("ha", SLAB_W, SHARED),
                 preferred_element_type=f32) + b("ha", SHARED)             # (bm, 32)

    # ---- PT embedding MLP (PT lanes selected by zero-padded weights) ----
    p1 = jnp.maximum(jnp.dot(x_bf, w("p1", SLAB_W, HIDDEN), preferred_element_type=f32)
                     + b("p1", HIDDEN), 0.0)
    pt = jnp.dot(p1.astype(bf16), w("p2", HIDDEN, SHARED),
                 preferred_element_type=f32) + b("p2", SHARED)             # (bm, 32)

    # ---- fused MLP: accumulate three K-blocks instead of a lane concat ----
    f1 = (jnp.dot(ha.astype(bf16), w("f1_ha", SHARED, FUSED_HID), preferred_element_type=f32)
          + jnp.dot(pt.astype(bf16), w("f1_pt", SHARED, FUSED_HID), preferred_element_type=f32)
          + jnp.dot(x_bf, w("f1_vel", SLAB_W, FUSED_HID), preferred_element_type=f32)
          + b("f1", FUSED_HID))
    f1 = jnp.maximum(f1, 0.0)                                              # (bm, 64)

    # final layer uses the full 128-lane weight/bias views (upper 64 columns are
    # structural zeros) so the result and its store are full-width, unmasked.
    out = jnp.dot(f1.astype(bf16), w("f2", FUSED_HID), preferred_element_type=f32) + b("f2")
    out_ref[...] = out.astype(out_ref.dtype)                               # (bm, 128)


# ---------------------------------------------------------------------------
# parameter init (deterministic, in-script)
# ---------------------------------------------------------------------------
def _dense(key, fan_in, fan_out):
    kw, kb = jax.random.split(key)
    scale = 1.0 / jnp.sqrt(jnp.float32(fan_in))
    w = jax.random.uniform(kw, (fan_in, fan_out), jnp.float32, -scale, scale)
    b = jax.random.uniform(kb, (1, fan_out), jnp.float32, -scale, scale)
    return w, b


def init_params(key):
    ks = jax.random.split(key, 8)
    w_h1, b_h1 = _dense(ks[0], HUMAN_DIM, HIDDEN)
    w_h2, b_h2 = _dense(ks[1], HIDDEN, HIDDEN)
    w_att = jax.random.normal(ks[2], (1, HIDDEN), jnp.float32) / jnp.sqrt(jnp.float32(HIDDEN))
    b_att = jnp.zeros((1, 1), jnp.float32)
    w_ha, b_ha = _dense(ks[3], HIDDEN, SHARED)
    w_p1, b_p1 = _dense(ks[4], PT_IN, HIDDEN)
    w_p2, b_p2 = _dense(ks[5], HIDDEN, SHARED)
    w_f1, b_f1 = _dense(ks[6], FUSED_IN, FUSED_HID)
    w_f2, b_f2 = _dense(ks[7], FUSED_HID, FUSED_OUT)
    return dict(w_h1=w_h1, b_h1=b_h1, w_h2=w_h2, b_h2=b_h2,
                w_att=w_att, b_att=b_att, w_ha=w_ha, b_ha=b_ha,
                w_p1=w_p1, b_p1=b_p1, w_p2=w_p2, b_p2=b_p2,
                w_f1=w_f1, b_f1=b_f1, w_f2=w_f2, b_f2=b_f2)


# ---------------------------------------------------------------------------
# host-side packing: weights (bf16, block-diag/tiled/zero-padded) + biases (f32)
# ---------------------------------------------------------------------------
def pack_params(p):
    f32 = jnp.float32

    def lanes(m):                                   # pad columns to 128 lanes
        m = jnp.asarray(m, f32)
        return jnp.pad(m, ((0, 0), (0, SLAB_W - m.shape[1])))

    eye = jnp.eye(HUMAN_NUM, dtype=f32)
    # layer 1: block-diag over humans; zero rows for the pt/vel/pad lanes of the slab
    w_h1 = jnp.pad(jnp.kron(eye, p["w_h1"]), ((0, SLAB_W - HUM_FLAT), (0, 0)))   # (128,128)
    w_h2 = jnp.kron(eye, p["w_h2"])                                              # (128,128)
    # attention scorer: block (r,c) -> w_att[r]; output lane block i = score of human i
    w_att = jnp.kron(eye, jnp.tile(p["w_att"].T, (1, HIDDEN)))                   # (128,128)
    w_ha = jnp.tile(p["w_ha"], (HUMAN_NUM, 1))                                   # (128,32)
    w_p1 = jnp.zeros((SLAB_W, HIDDEN), f32).at[PT_OFF:PT_OFF + PT_IN].set(p["w_p1"])
    w_f1_vel = jnp.zeros((SLAB_W, FUSED_HID), f32).at[VEL_OFF:VEL_OFF + VEL_DIM].set(
        p["w_f1"][2 * SHARED:])
    sections = [w_h1, w_h2, w_att, w_ha, w_p1, p["w_p2"],
                p["w_f1"][:SHARED], p["w_f1"][SHARED:2 * SHARED], w_f1_vel, p["w_f2"]]
    wpack = jnp.concatenate([lanes(s) for s in sections], axis=0).astype(jnp.bfloat16)

    def brow(v, tile=1):
        v = jnp.tile(jnp.asarray(v, f32).reshape(1, -1), (1, tile))
        return jnp.pad(v, ((0, 0), (0, SLAB_W - v.shape[1])))

    bpack = jnp.concatenate([
        brow(p["b_h1"], HUMAN_NUM), brow(p["b_h2"], HUMAN_NUM), brow(p["b_att"]),
        brow(p["b_ha"]), brow(p["b_p1"]), brow(p["b_p2"]),
        brow(p["b_f1"]), brow(p["b_f2"])], axis=0)

    assert wpack.shape == (W_ROWS, SLAB_W) and bpack.shape == (B_ROWS, SLAB_W)
    return wpack, bpack


def pack_inputs(human_states, past_robot_velocities, pt_state):
    btot = human_states.shape[0]
    pad = SLAB_W - (HUM_FLAT + PT_IN + VEL_DIM)
    return jnp.concatenate([
        human_states.reshape(btot, HUM_FLAT).astype(jnp.float32),
        pt_state.astype(jnp.float32),
        past_robot_velocities.astype(jnp.float32),
        jnp.zeros((btot, pad), jnp.float32)], axis=-1)          # (btot, 128)


# ---------------------------------------------------------------------------
# wrapper
# ---------------------------------------------------------------------------
def shared_network_forward(human_states, past_robot_velocities, pt_state,
                           weight_pack, bias_pack, *, block_b=None):
    btot = human_states.shape[0]
    if block_b is None:
        # >=2 "parallel" grid blocks let a v7x megacore split the batch across
        # TensorCores; on single-TC v5e/v6e every extra grid step is ~0.35us of
        # pure overhead, so only split once the batch is big enough to amortise it.
        block_b = btot // 2 if (btot >= 32 and (btot // 2) % 8 == 0) else btot
    assert btot % block_b == 0
    grid_n = btot // block_b
    if grid_n > 1:
        assert block_b % 8 == 0

    x = pack_inputs(human_states, past_robot_velocities, pt_state)

    macs = (btot * HUMAN_NUM * (HUMAN_DIM * HIDDEN + HIDDEN * HIDDEN + HIDDEN)
            + btot * (HIDDEN * SHARED + PT_IN * HIDDEN + HIDDEN * SHARED
                      + FUSED_IN * FUSED_HID + FUSED_HID * FUSED_OUT))
    bytes_accessed = (x.size * 4 + weight_pack.size * 2 + bias_pack.size * 4
                      + btot * SLAB_W * 4)

    out = pl.pallas_call(
        shared_network_kernel,
        out_shape=jax.ShapeDtypeStruct((btot, SLAB_W), jnp.float32),
        grid=(grid_n,),
        in_specs=[
            pl.BlockSpec((block_b, SLAB_W), lambda i: (i, 0)),    # packed activations
            pl.BlockSpec((W_ROWS, SLAB_W), lambda i: (0, 0)),     # weights stay resident
            pl.BlockSpec((B_ROWS, SLAB_W), lambda i: (0, 0)),     # biases stay resident
        ],
        out_specs=pl.BlockSpec((block_b, SLAB_W), lambda i: (i, 0)),
        compiler_params=pltpu.CompilerParams(
            dimension_semantics=("parallel",)),                   # megacore on v7x
        cost_estimate=pl.CostEstimate(flops=2 * macs,
                                      transcendentals=btot * (SLAB_W + 1),
                                      bytes_accessed=bytes_accessed),
    )(x, weight_pack, bias_pack)

    return out[:, :FUSED_OUT]                                     # (btot, 64)


# ---------------------------------------------------------------------------
# pure-JAX reference (same math, unpacked f32 params) for a sanity check
# ---------------------------------------------------------------------------
def shared_network_reference(human_states, past_robot_velocities, pt_state, p):
    hp = jax.lax.Precision.HIGHEST
    h1 = jax.nn.relu(jnp.einsum("bhd,de->bhe", human_states, p["w_h1"],
                                precision=hp) + p["b_h1"])
    h2 = jax.nn.relu(jnp.einsum("bhe,ef->bhf", h1, p["w_h2"],
                                precision=hp) + p["b_h2"])
    scores = jnp.sum(h2 * p["w_att"], axis=-1) + p["b_att"]
    att = jax.nn.softmax(scores, axis=-1)
    pooled = jnp.sum(att[..., None] * h2, axis=1)
    ha = jnp.dot(pooled, p["w_ha"], precision=hp) + p["b_ha"]
    p1 = jax.nn.relu(jnp.dot(pt_state, p["w_p1"], precision=hp) + p["b_p1"])
    pt = jnp.dot(p1, p["w_p2"], precision=hp) + p["b_p2"]
    x = jnp.concatenate([ha, pt, past_robot_velocities], axis=-1)
    f1 = jax.nn.relu(jnp.dot(x, p["w_f1"], precision=hp) + p["b_f1"])
    return jnp.dot(f1, p["w_f2"], precision=hp) + p["b_f2"]


if __name__ == "__main__":
    key = jax.random.PRNGKey(0)
    k_h, k_v, k_p, k_params = jax.random.split(key, 4)

    human_states = jax.random.normal(k_h, (B, HUMAN_NUM, HUMAN_DIM), jnp.float32)
    past_robot_velocities = jax.random.normal(k_v, (B, VEL_DIM), jnp.float32)
    pt_state = jax.random.normal(k_p, (B, PT_IN), jnp.float32)

    params = init_params(k_params)
    weight_pack, bias_pack = pack_params(params)

    fwd = jax.jit(shared_network_forward)
    out = jax.block_until_ready(fwd(human_states, past_robot_velocities, pt_state,
                                    weight_pack, bias_pack))

    assert out.shape == (B, FUSED_OUT) and out.dtype == jnp.float32
    assert bool(jnp.all(jnp.isfinite(out)))

    ref = shared_network_reference(human_states, past_robot_velocities, pt_state, params)
    max_err = float(jnp.max(jnp.abs(out - ref)))
    assert max_err < 5e-2, f"kernel/reference mismatch: max |err| = {max_err}"

    print("KERNEL_OK")
</pallas_src>

<mosaic_0001>
module attributes {stable_mosaic.version = 11 : i64} {
  func.func @shared_network_kernel(%arg0: i32, %arg1: memref<8x128xf32, #tpu.memory_space<vmem>>, %arg2: memref<928x128xbf16, #tpu.memory_space<vmem>>, %arg3: memref<8x128xf32, #tpu.memory_space<vmem>>, %arg4: memref<8x128xf32, #tpu.memory_space<vmem>>) attributes {dimension_semantics = [#tpu.dimension_semantics<parallel>], iteration_bounds = array<i64: 1>, scalar_prefetch = 0 : i64, scratch_operands = 0 : i64, tpu.core_type = #tpu.core_type<tc>, window_params = [{transform_indices = @transform_0, window_bounds = array<i64: 8, 128>}, {pipeline_mode = #tpu.pipeline_mode<synchronous>, transform_indices = @transform_1, window_bounds = array<i64: 928, 128>}, {pipeline_mode = #tpu.pipeline_mode<synchronous>, transform_indices = @transform_2, window_bounds = array<i64: 8, 128>}, {transform_indices = @transform_3, window_bounds = array<i64: 8, 128>}]} {
    %c0 = arith.constant 0 : index
    %c0_0 = arith.constant 0 : index
    %0 = vector.load %arg1[%c0, %c0_0] : memref<8x128xf32, #tpu.memory_space<vmem>>, vector<8x128xf32>
    %1 = arith.truncf %0 : vector<8x128xf32> to vector<8x128xbf16>
    %c0_1 = arith.constant 0 : index
    %c0_2 = arith.constant 0 : index
    %2 = vector.load %arg2[%c0_1, %c0_2] : memref<928x128xbf16, #tpu.memory_space<vmem>>, vector<128x128xbf16>
    %cst = arith.constant dense<0.000000e+00> : vector<8x128xf32>
    %3 = tpu.matmul %1, %2, %cst {dimension_numbers = #tpu.dot_dimension_numbers<[1], [0], [0], [1], [0, 0, 1, 1], [], []>} : vector<8x128xbf16>, vector<128x128xbf16>, vector<8x128xf32> -> vector<8x128xf32>
    %c0_3 = arith.constant 0 : index
    %c0_4 = arith.constant 0 : index
    %4 = vector.load %arg3[%c0_3, %c0_4] : memref<8x128xf32, #tpu.memory_space<vmem>>, vector<1x128xf32>
    %5 = vector.broadcast %4 : vector<1x128xf32> to vector<8x128xf32>
    %6 = arith.addf %3, %5 : vector<8x128xf32>
    %cst_5 = arith.constant 0.000000e+00 : f32
    %7 = vector.broadcast %cst_5 : f32 to vector<8x128xf32>
    %8 = arith.maximumf %6, %7 : vector<8x128xf32>
    %9 = arith.truncf %8 : vector<8x128xf32> to vector<8x128xbf16>
    %c128 = arith.constant 128 : index
    %c0_6 = arith.constant 0 : index
    %10 = vector.load %arg2[%c128, %c0_6] : memref<928x128xbf16, #tpu.memory_space<vmem>>, vector<128x128xbf16>
    %cst_7 = arith.constant dense<0.000000e+00> : vector<8x128xf32>
    %11 = tpu.matmul %9, %10, %cst_7 {dimension_numbers = #tpu.dot_dimension_numbers<[1], [0], [0], [1], [0, 0, 1, 1], [], []>} : vector<8x128xbf16>, vector<128x128xbf16>, vector<8x128xf32> -> vector<8x128xf32>
    %c1 = arith.constant 1 : index
    %c0_8 = arith.constant 0 : index
    %12 = vector.load %arg3[%c1, %c0_8] : memref<8x128xf32, #tpu.memory_space<vmem>>, vector<1x128xf32>
    %13 = vector.broadcast %12 : vector<1x128xf32> to vector<8x128xf32>
    %14 = arith.addf %11, %13 : vector<8x128xf32>
    %cst_9 = arith.constant 0.000000e+00 : f32
    %15 = vector.broadcast %cst_9 : f32 to vector<8x128xf32>
    %16 = arith.maximumf %14, %15 : vector<8x128xf32>
    %17 = arith.truncf %16 : vector<8x128xf32> to vector<8x128xbf16>
    %c256 = arith.constant 256 : index
    %c0_10 = arith.constant 0 : index
    %18 = vector.load %arg2[%c256, %c0_10] : memref<928x128xbf16, #tpu.memory_space<vmem>>, vector<128x128xbf16>
    %cst_11 = arith.constant dense<0.000000e+00> : vector<8x128xf32>
    %19 = tpu.matmul %17, %18, %cst_11 {dimension_numbers = #tpu.dot_dimension_numbers<[1], [0], [0], [1], [0, 0, 1, 1], [], []>} : vector<8x128xbf16>, vector<128x128xbf16>, vector<8x128xf32> -> vector<8x128xf32>
    %c2 = arith.constant 2 : index
    %c0_12 = arith.constant 0 : index
    %20 = vector.load %arg3[%c2, %c0_12] : memref<8x128xf32, #tpu.memory_space<vmem>>, vector<1x1xf32>
    %21 = vector.broadcast %20 : vector<1x1xf32> to vector<8x128xf32>
    %22 = arith.addf %19, %21 : vector<8x128xf32>
    %cst_13 = arith.constant dense<0xFF800000> : vector<8xf32>
    %23 = vector.multi_reduction <maximumf>, %22, %cst_13 [1] : vector<8x128xf32> to vector<8xf32>
    %24 = vector.shape_cast %23 : vector<8xf32> to vector<8x1xf32>
    %25 = vector.broadcast %24 : vector<8x1xf32> to vector<8x128xf32>
    %26 = arith.subf %22, %25 : vector<8x128xf32>
    %27 = math.exp %26 : vector<8x128xf32>
    %cst_14 = arith.constant dense<0.000000e+00> : vector<8xf32>
    %28 = vector.multi_reduction <add>, %27, %cst_14 [1] : vector<8x128xf32> to vector<8xf32>
    %29 = vector.shape_cast %28 : vector<8xf32> to vector<8x1xf32>
    %30 = tpu.reciprocal %29 {approx = true} : vector<8x1xf32> -> vector<8x1xf32>
    %cst_15 = arith.constant 3.200000e+01 : f32
    %31 = vector.broadcast %cst_15 : f32 to vector<8x1xf32>
    %32 = arith.mulf %30, %31 : vector<8x1xf32>
    %33 = vector.broadcast %32 : vector<8x1xf32> to vector<8x128xf32>
    %34 = arith.mulf %27, %33 : vector<8x128xf32>
    %35 = arith.mulf %34, %16 : vector<8x128xf32>
    %36 = arith.truncf %35 : vector<8x128xf32> to vector<8x128xbf16>
    %c384 = arith.constant 384 : index
    %c0_16 = arith.constant 0 : index
    %37 = vector.load %arg2[%c384, %c0_16] : memref<928x128xbf16, #tpu.memory_space<vmem>>, vector<128x32xbf16>
    %cst_17 = arith.constant dense<0.000000e+00> : vector<8x32xf32>
    %38 = tpu.matmul %36, %37, %cst_17 {dimension_numbers = #tpu.dot_dimension_numbers<[1], [0], [0], [1], [0, 0, 1, 1], [], []>} : vector<8x128xbf16>, vector<128x32xbf16>, vector<8x32xf32> -> vector<8x32xf32>
    %c3 = arith.constant 3 : index
    %c0_18 = arith.constant 0 : index
    %39 = vector.load %arg3[%c3, %c0_18] : memref<8x128xf32, #tpu.memory_space<vmem>>, vector<1x32xf32>
    %40 = vector.broadcast %39 : vector<1x32xf32> to vector<8x32xf32>
    %41 = arith.addf %38, %40 : vector<8x32xf32>
    %c512 = arith.constant 512 : index
    %c0_19 = arith.constant 0 : index
    %42 = vector.load %arg2[%c512, %c0_19] : memref<928x128xbf16, #tpu.memory_space<vmem>>, vector<128x32xbf16>
    %cst_20 = arith.constant dense<0.000000e+00> : vector<8x32xf32>
    %43 = tpu.matmul %1, %42, %cst_20 {dimension_numbers = #tpu.dot_dimension_numbers<[1], [0], [0], [1], [0, 0, 1, 1], [], []>} : vector<8x128xbf16>, vector<128x32xbf16>, vector<8x32xf32> -> vector<8x32xf32>
    %c4 = arith.constant 4 : index
    %c0_21 = arith.constant 0 : index
    %44 = vector.load %arg3[%c4, %c0_21] : memref<8x128xf32, #tpu.memory_space<vmem>>, vector<1x32xf32>
    %45 = vector.broadcast %44 : vector<1x32xf32> to vector<8x32xf32>
    %46 = arith.addf %43, %45 : vector<8x32xf32>
    %cst_22 = arith.constant 0.000000e+00 : f32
    %47 = vector.broadcast %cst_22 : f32 to vector<8x32xf32>
    %48 = arith.maximumf %46, %47 : vector<8x32xf32>
    %49 = arith.truncf %48 : vector<8x32xf32> to vector<8x32xbf16>
    %c640 = arith.constant 640 : index
    %c0_23 = arith.constant 0 : index
    %50 = vector.load %arg2[%c640, %c0_23] : memref<928x128xbf16, #tpu.memory_space<vmem>>, vector<32x32xbf16>
    %cst_24 = arith.constant dense<0.000000e+00> : vector<8x32xf32>
    %51 = tpu.matmul %49, %50, %cst_24 {dimension_numbers = #tpu.dot_dimension_numbers<[1], [0], [0], [1], [0, 0, 1, 1], [], []>} : vector<8x32xbf16>, vector<32x32xbf16>, vector<8x32xf32> -> vector<8x32xf32>
    %c5 = arith.constant 5 : index
    %c0_25 = arith.constant 0 : index
    %52 = vector.load %arg3[%c5, %c0_25] : memref<8x128xf32, #tpu.memory_space<vmem>>, vector<1x32xf32>
    %53 = vector.broadcast %52 : vector<1x32xf32> to vector<8x32xf32>
    %54 = arith.addf %51, %53 : vector<8x32xf32>
    %55 = arith.truncf %41 : vector<8x32xf32> to vector<8x32xbf16>
    %c672 = arith.constant 672 : index
    %c0_26 = arith.constant 0 : index
    %56 = vector.load %arg2[%c672, %c0_26] : memref<928x128xbf16, #tpu.memory_space<vmem>>, vector<32x64xbf16>
    %cst_27 = arith.constant dense<0.000000e+00> : vector<8x64xf32>
    %57 = tpu.matmul %55, %56, %cst_27 {dimension_numbers = #tpu.dot_dimension_numbers<[1], [0], [0], [1], [0, 0, 1, 1], [], []>} : vector<8x32xbf16>, vector<32x64xbf16>, vector<8x64xf32> -> vector<8x64xf32>
    %58 = arith.truncf %54 : vector<8x32xf32> to vector<8x32xbf16>
    %c704 = arith.constant 704 : index
    %c0_28 = arith.constant 0 : index
    %59 = vector.load %arg2[%c704, %c0_28] : memref<928x128xbf16, #tpu.memory_space<vmem>>, vector<32x64xbf16>
    %cst_29 = arith.constant dense<0.000000e+00> : vector<8x64xf32>
    %60 = tpu.matmul %58, %59, %cst_29 {dimension_numbers = #tpu.dot_dimension_numbers<[1], [0], [0], [1], [0, 0, 1, 1], [], []>} : vector<8x32xbf16>, vector<32x64xbf16>, vector<8x64xf32> -> vector<8x64xf32>
    %61 = arith.addf %57, %60 : vector<8x64xf32>
    %c736 = arith.constant 736 : index
    %c0_30 = arith.constant 0 : index
    %62 = vector.load %arg2[%c736, %c0_30] : memref<928x128xbf16, #tpu.memory_space<vmem>>, vector<128x64xbf16>
    %cst_31 = arith.constant dense<0.000000e+00> : vector<8x64xf32>
    %63 = tpu.matmul %1, %62, %cst_31 {dimension_numbers = #tpu.dot_dimension_numbers<[1], [0], [0], [1], [0, 0, 1, 1], [], []>} : vector<8x128xbf16>, vector<128x64xbf16>, vector<8x64xf32> -> vector<8x64xf32>
    %64 = arith.addf %61, %63 : vector<8x64xf32>
    %c6 = arith.constant 6 : index
    %c0_32 = arith.constant 0 : index
    %65 = vector.load %arg3[%c6, %c0_32] : memref<8x128xf32, #tpu.memory_space<vmem>>, vector<1x64xf32>
    %66 = vector.broadcast %65 : vector<1x64xf32> to vector<8x64xf32>
    %67 = arith.addf %64, %66 : vector<8x64xf32>
    %cst_33 = arith.constant 0.000000e+00 : f32
    %68 = vector.broadcast %cst_33 : f32 to vector<8x64xf32>
    %69 = arith.maximumf %67, %68 : vector<8x64xf32>
    %70 = arith.truncf %69 : vector<8x64xf32> to vector<8x64xbf16>
    %c864 = arith.constant 864 : index
    %c0_34 = arith.constant 0 : index
    %71 = vector.load %arg2[%c864, %c0_34] : memref<928x128xbf16, #tpu.memory_space<vmem>>, vector<64x128xbf16>
    %cst_35 = arith.constant dense<0.000000e+00> : vector<8x128xf32>
    %72 = tpu.matmul %70, %71, %cst_35 {dimension_numbers = #tpu.dot_dimension_numbers<[1], [0], [0], [1], [0, 0, 1, 1], [], []>} : vector<8x64xbf16>, vector<64x128xbf16>, vector<8x128xf32> -> vector<8x128xf32>
    %c7 = arith.constant 7 : index
    %c0_36 = arith.constant 0 : index
    %73 = vector.load %arg3[%c7, %c0_36] : memref<8x128xf32, #tpu.memory_space<vmem>>, vector<1x128xf32>
    %74 = vector.broadcast %73 : vector<1x128xf32> to vector<8x128xf32>
    %75 = arith.addf %72, %74 : vector<8x128xf32>
    %c0_37 = arith.constant 0 : index
    %c0_38 = arith.constant 0 : index
    %76 = vector.load %arg4[%c0_37, %c0_38] : memref<8x128xf32, #tpu.memory_space<vmem>>, vector<8x128xf32>
    tpu.vector_store %arg4[%c0_37, %c0_38], %75 {strides = array<i32>} : memref<8x128xf32, #tpu.memory_space<vmem>>, vector<8x128xf32>,
    return
  }
  func.func @transform_0(%arg0: i32) -> (i32, i32) {
    %c0_i32 = arith.constant 0 : i32
    %c0_i32_0 = arith.constant 0 : i32
    return %arg0, %c0_i32 : i32, i32
  }
  func.func @transform_1(%arg0: i32) -> (i32, i32) {
    %c0_i32 = arith.constant 0 : i32
    %c0_i32_0 = arith.constant 0 : i32
    %c0_i32_1 = arith.constant 0 : i32
    return %c0_i32, %c0_i32_0 : i32, i32
  }
  func.func @transform_2(%arg0: i32) -> (i32, i32) {
    %c0_i32 = arith.constant 0 : i32
    %c0_i32_0 = arith.constant 0 : i32
    %c0_i32_1 = arith.constant 0 : i32
    return %c0_i32, %c0_i32_0 : i32, i32
  }
  func.func @transform_3(%arg0: i32) -> (i32, i32) {
    %c0_i32 = arith.constant 0 : i32
    %c0_i32_0 = arith.constant 0 : i32
    return %arg0, %c0_i32 : i32, i32
  }
}

</mosaic_0001>

<bundles_post_ra>
// kernel: shared_network_forward.1
= control target key start
LH: loop header
LB: loop body
LE: loop exit
PB: predicated region body
PF: predicated region fallthrough
CT: control target
= control target key end

     0   :  { %8 = vsyncpa [#allocation3], 0  ;;  %s1569_s0 = inlined_call_operand.vmem [shape: f32[8,128], index: 0, kind: input, shape index: {}]   ;;  %s1570_s1 = inlined_call_operand.hbm [shape: bf16[928,128], index: 1, kind: input, shape index: {}]   ;;  %s1571_s2 = inlined_call_operand.vmem [shape: f32[8,128], index: 2, kind: input, shape index: {}]   ;;  %s1572_s3 = inlined_call_operand.hbm [shape: f32[8,128], index: 3, kind: output, shape index: {}]  }
   0x1   :  { %9 = vsyncpa [#allocation4], 0  ;;  %s1401_s12 = smov [#allocation2]   ;;  %s1353_s16 = scalar_lea.hbm %s1570_s1, 7424 }
   0x2   :  { %s17_s13 = sshll.u32 %s1401_s12, 4  ;;  %p1354_p0 = scmp.ne.s32.totalorder %s1570_s1, %s1353_s16  ;;  %s18_s13 = int_to_ptr.vmem [resolvable:$true] %s17_s13 }
   0x3   :  { %p1357_p1 = scmp.lt.u32.totalorder %s1353_s16, %s1570_s1 }
   0x5   :  { %p1359_p2 = pnand %p1357_p1, %p1354_p0 }
   0x7   :  { %1362 = shalt.err (!%p1359_p2)
}
   0x8   :  { %s1363_s21 = scalar_lea.vmem %s18_s13, 7424  ;;  %p1368_p4 = scmp.lt.s32.totalorder %s18_s13, %s18_s13 }
   0x9   :  { %p1364_p3 = scmp.ne.s32.totalorder %s18_s13, %s1363_s21  ;;  %p1369_p5 = scmp.lt.s32.totalorder %s1363_s21, %s1363_s21 }
   0xb   :  { %p1370_p6 = por %p1369_p5, %p1368_p4 }
   0xd   :  { %p1371_p7 = pnand %p1370_p6, %p1364_p3 }
   0xf   :  { %1374 = shalt.err (!%p1371_p7)
}
  0x10   :  { %s1402_s22 = smov 64   ;;  %s1403_s23 = smov 4  }
  0x11   :  { %23 = dma.hbm_to_vmem [thread:$0]  %s1570_s1, 7424, %s18_s13, [#allocation3], %s1402_s22, %s1402_s22, %s1403_s23  }
  0x12   :  { %1397 = dma.done.wait [#allocation3], 7424  }
  0x13   :  { %1398 = vsyncadd [#allocation3], 4294959872  ;;  %v1404_v0 = vmov 0.0   ;;  %vm1405_vm0 = vmmov 0   ;;  %v1291_v1 = vld [vmem:[#allocation2] sm:$0xff]   ;;  %v1292_v2 = vld [vmem:[#allocation2 + $0x8] sm:$0xff]  }
  0x14   :  { %1127 = vmatprep.subr.bf16.mxu0 %v1404_v0  ;;  %1143 = vmatprep.mubr.msk.bf16.mxu0 %vm1405_vm0, %v1404_v0  ;;  %v1293_v3 = vld [vmem:[#allocation2 + $0x10] sm:$0xff]   ;;  %v1299_v4 = vld [vmem:[#allocation2 + $0x40] sm:$0xff]   ;;  %v1294_v5 = vld [vmem:[#allocation2 + $0x18] sm:$0xff]   ;;  %vm616_vm1 = vcmask 261120   ;;  %vm930_vm2 = vcmask 523264   ;;  %s1406_s16 = smov [#allocation5]  }
  0x15   :  { %1147 = vmatprep.subr.bf16.mxu1 %v1404_v0  ;;  %1163 = vmatprep.mubr.msk.bf16.mxu1 %vm1405_vm0, %v1404_v0  ;;  %v1300_v6 = vld [vmem:[#allocation2 + $0x48] sm:$0xff]   ;;  %v1295_v7 = vld [vmem:[#allocation2 + $0x20] sm:$0xff]   ;;  %v1301_v8 = vld [vmem:[#allocation2 + $0x50] sm:$0xff]   ;;  %s981_s17 = sshll.u32 %s1406_s16, 4  ;;  %s982_s17 = int_to_ptr.vmem [resolvable:$true] %s981_s17 }
  0x16   :  { %1128 = vmatpush3.bf16.msra.mxu0 %v1291_v1  ;;  %1148 = vmatpush3.bf16.msra.mxu1 %v1299_v4  ;;  %v1296_v9 = vld [vmem:[#allocation2 + $0x28] sm:$0xff]   ;;  %v1302_v10 = vld [vmem:[#allocation2 + $0x58] sm:$0xff]   ;;  %v1297_v11 = vld [vmem:[#allocation2 + $0x30] sm:$0xff]   ;;  %s1375_s18 = scalar_lea.vmem %s982_s17, 128  ;;  %p1380_p9 = scmp.lt.s32.totalorder %s982_s17, %s982_s17 }
  0x17   :  { %1129 = vmatprep.subr.bf16.mxu0 %v1404_v0  ;;  %1149 = vmatprep.subr.bf16.mxu1 %v1404_v0  ;;  %v1303_v12 = vld [vmem:[#allocation2 + $0x60] sm:$0xff]   ;;  %v1298_v13 = vld [vmem:[#allocation2 + $0x38] sm:$0xff]   ;;  %v1304_v15 = vld [vmem:[#allocation2 + $0x68] sm:$0xff]   ;;  %p1376_p8 = scmp.ne.s32.totalorder %s982_s17, %s1375_s18  ;;  %p1381_p10 = scmp.lt.s32.totalorder %s1375_s18, %s1375_s18 }
  0x18   :  { %v30_v14 = vld [vmem:[%s1569_s0] sm:$0xff]  ;;  %v1305_v17 = vld [vmem:[#allocation2 + $0x70] sm:$0xff]   ;;  %v1306_v18 = vld [vmem:[#allocation2 + $0x78] sm:$0xff]  }
  0x19   :  { %v1460_v16 = vpack.c.bf16 %v30_v14, %v30_v14  ;;  %v1307_v19 = vld [vmem:[#allocation2 + $0x80] sm:$0xff]   ;;  %v1308_v20 = vld [vmem:[#allocation2 + $0x88] sm:$0xff]   ;;  %v1309_v21 = vld [vmem:[#allocation2 + $0x90] sm:$0xff]   ;;  %p1382_p11 = por %p1381_p10, %p1380_p9 }
  0x1a   :  { %1130 = vmatpush3.bf16.msra.mxu0 %v1292_v2  ;;  %1150 = vmatpush3.bf16.msra.mxu1 %v1300_v6  ;;  %v1310_v22 = vld [vmem:[#allocation2 + $0x98] sm:$0xff]   ;;  %v1311_v23 = vld [vmem:[#allocation2 + $0xa0] sm:$0xff]   ;;  %v1312_v24 = vld [vmem:[#allocation2 + $0xa8] sm:$0xff]  }
  0x1b   :  { %1131 = vmatprep.subr.bf16.mxu0 %v1404_v0  ;;  %1151 = vmatprep.subr.bf16.mxu1 %v1404_v0  ;;  %v990_v25 = vld [vmem:[%s1571_s2] ss:$0 sm:$0xff]  ;;  %v1313_v33 = vld [vmem:[#allocation2 + $0xb0] sm:$0xff]   ;;  %v1314_v34 = vld [vmem:[#allocation2 + $0xb8] sm:$0xff]   ;;  %p1383_p12 = pnand %p1382_p11, %p1376_p8 }
  0x1c   :  { %v270_v35 = vld [vmem:[%s1571_s2 + $0x2] sm:$0x1]  ;;  %v999_v36 = vld [vmem:[%s1571_s2 + $0x1] ss:$0 sm:$0xff]  ;;  %v1316_v45 = vld [vmem:[#allocation2 + $0x108] sm:$0xff]  }
  0x1d   :  { %1283 = vpush %v270_v35  ;;  %v1315_v44 = vld [vmem:[#allocation2 + $0x100] sm:$0xff]   ;;  %v1317_v46 = vld [vmem:[#allocation2 + $0x110] sm:$0xff]   ;;  %v1318_v47 = vld [vmem:[#allocation2 + $0x118] sm:$0xff]  }
  0x1e   :  { %1132 = vmatpush3.bf16.msra.mxu0 %v1293_v3  ;;  %1152 = vmatpush3.bf16.msra.mxu1 %v1301_v8  ;;  %v1319_v48 = vld [vmem:[#allocation2 + $0x120] sm:$0xff]   ;;  %v1320_v49 = vld [vmem:[#allocation2 + $0x128] sm:$0xff]   ;;  %v1321_v50 = vld [vmem:[#allocation2 + $0x130] sm:$0xff]  }
  0x1f   :  { %1133 = vmatprep.subr.bf16.mxu0 %v1404_v0  ;;  %1153 = vmatprep.subr.bf16.mxu1 %v1404_v0  ;;  %v1322_v51 = vld [vmem:[#allocation2 + $0x138] sm:$0xff]   ;;  %v1323_v58 = vld [vmem:[#allocation2 + $0xc0] sm:$0xff]   ;;  %v1324_v59 = vld [vmem:[#allocation2 + $0xc8] sm:$0xff]  }
  0x20   :  { %v1325_v60 = vld [vmem:[#allocation2 + $0xd0] sm:$0xff]   ;;  %v1326_v61 = vld [vmem:[#allocation2 + $0xd8] sm:$0xff]   ;;  %v1327_v3 = vld [vmem:[#allocation2 + $0xe0] sm:$0xff]  }
  0x21   :  { %v1328_v4 = vld [vmem:[#allocation2 + $0xe8] sm:$0xff]   ;;  %v1330_v6 = vld [vmem:[#allocation2 + $0xf8] sm:$0xff]   ;;  %v1025_v14 = vld [vmem:[%s1571_s2 + $0x4] ss:$0 sm:$0xff] }
  0x22   :  { %1134 = vmatpush3.bf16.msra.mxu0 %v1294_v5  ;;  %1154 = vmatpush3.bf16.msra.mxu1 %v1302_v10  ;;  %v1329_v5 = vld [vmem:[#allocation2 + $0xf0] sm:$0xff]  }
  0x23   :  { %1135 = vmatprep.subr.bf16.mxu0 %v1404_v0  ;;  %1155 = vmatprep.subr.bf16.mxu1 %v1404_v0  ;;  %v1335_v35 = vld [vmem:[#allocation2 + $0x150] sm:$0xff]  }
  0x26   :  { %1136 = vmatpush3.bf16.msra.mxu0 %v1295_v7  ;;  %1156 = vmatpush3.bf16.msra.mxu1 %v1303_v12 }
  0x27   :  { %1137 = vmatprep.subr.bf16.mxu0 %v1404_v0  ;;  %1157 = vmatprep.subr.bf16.mxu1 %v1404_v0 }
  0x2a   :  { %1138 = vmatpush3.bf16.msra.mxu0 %v1296_v9  ;;  %1158 = vmatpush3.bf16.msra.mxu1 %v1304_v15 }
  0x2b   :  { %1139 = vmatprep.subr.bf16.mxu0 %v1404_v0  ;;  %1159 = vmatprep.subr.bf16.mxu1 %v1404_v0 }
  0x2e   :  { %1140 = vmatpush3.bf16.msra.mxu0 %v1297_v11  ;;  %1160 = vmatpush3.bf16.msra.mxu1 %v1305_v17 }
  0x2f   :  { %1141 = vmatprep.subr.bf16.mxu0 %v1404_v0  ;;  %1161 = vmatprep.subr.bf16.mxu1 %v1404_v0 }
  0x32   :  { %1142 = vmatpush3.bf16.msra.mxu0 %v1298_v13  ;;  %1162 = vmatpush3.bf16.msra.mxu1 %v1306_v18 }
  0x33   :  { %1167 = vmatprep.subr.bf16.mxu0 %v1404_v0  ;;  %1187 = vmatprep.subr.bf16.mxu1 %v1404_v0 }
  0x35   :  { %1144 = vmatmul.mubr.bf16.vlgmr.msra.gmra.mrb[0].mxu0 %v1460_v16 }
  0x36   :  { %1183 = vmatprep.mubr.msk.bf16.mxu0 %vm1405_vm0, %v1404_v0  ;;  %1168 = vmatpush3.bf16.msra.mxu0 %v1307_v19  ;;  %v1331_v19 = vld [vmem:[#allocation2 + $0x140] sm:$0xff]  }
  0x37   :  { %1169 = vmatprep.subr.bf16.mxu0 %v1404_v0 }
  0x3a   :  { %1170 = vmatpush3.bf16.msra.mxu0 %v1308_v20 }
  0x3b   :  { %1171 = vmatprep.subr.bf16.mxu0 %v1404_v0 }
  0x3e   :  { %1172 = vmatpush3.bf16.msra.mxu0 %v1309_v21 }
  0x3f   :  { %1173 = vmatprep.subr.bf16.mxu0 %v1404_v0 }
  0x42   :  { %1174 = vmatpush3.bf16.msra.mxu0 %v1310_v22  ;;  %v1332_v22 = vld [vmem:[#allocation2 + $0x148] sm:$0xff]  }
  0x43   :  { %1175 = vmatprep.subr.bf16.mxu0 %v1404_v0 }
  0x46   :  { %1176 = vmatpush3.bf16.msra.mxu0 %v1311_v23 }
  0x47   :  { %1177 = vmatprep.subr.bf16.mxu0 %v1404_v0 }
  0x4a   :  { %1178 = vmatpush3.bf16.msra.mxu0 %v1312_v24  ;;  %v1333_v24 = vld [vmem:[#allocation2 + $0x160] sm:$0xff]  }
  0x4b   :  { %1179 = vmatprep.subr.bf16.mxu0 %v1404_v0 }
  0x4e   :  { %1180 = vmatpush3.bf16.msra.mxu0 %v1313_v33  ;;  %s1284_s5 = spop %1283 }
  0x4f   :  { %1181 = vmatprep.subr.bf16.mxu0 %v1404_v0  ;;  %v273_v52 = vstv %s1284_s5 }
  0x52   :  { %1182 = vmatpush3.bf16.msra.mxu0 %v1314_v34 }
  0x53   :  { %1207 = vmatprep.subr.bf16.mxu0 %v1404_v0 }
 0x108   :  { %v135_v26 = vpop.f32.mrb[0].mxu0 }
 0x109   :  { %v136_v27 = vadd.f32 %v990_v25, %v135_v26  ;;  %v1145_v28 = vpop.f32.mrb[1].mxu0  ;;  %v1334_v25 = vld [vmem:[#allocation2 + $0x168] sm:$0xff]  }
 0x10a   :  { %v138_v29 = vpop.f32.mrb[2].mxu0 }
 0x10b   :  { %v141_v30 = vmax.f32 %v136_v27, 0.0  ;;  %v1146_v31 = vpop.f32.mrb[3].mxu0 }
 0x10d   :  { %v142_v32 = vpack.c.bf16 %v141_v30, %v141_v30  ;;  %v1034_v30 = vld [vmem:[%s1571_s2 + $0x5] ss:$0 sm:$0xff] }
 0x10f   :  { %1164 = vmatmul.mubr.bf16.vlgmr.msra.gmra.mrb[0].mxu1 %v142_v32 }
 0x110   :  { %1203 = vmatprep.mubr.msk.bf16.mxu1 %vm1405_vm0, %v1404_v0  ;;  %1188 = vmatpush3.bf16.msra.mxu1 %v1323_v58 }
 0x111   :  { %1189 = vmatprep.subr.bf16.mxu1 %v1404_v0 }
 0x114   :  { %1190 = vmatpush3.bf16.msra.mxu1 %v1324_v59 }
 0x115   :  { %1191 = vmatprep.subr.bf16.mxu1 %v1404_v0 }
 0x118   :  { %1192 = vmatpush3.bf16.msra.mxu1 %v1325_v60 }
 0x119   :  { %1193 = vmatprep.subr.bf16.mxu1 %v1404_v0 }
 0x11c   :  { %1194 = vmatpush3.bf16.msra.mxu1 %v1326_v61 }
 0x11d   :  { %1195 = vmatprep.subr.bf16.mxu1 %v1404_v0 }
 0x120   :  { %1196 = vmatpush3.bf16.msra.mxu1 %v1327_v3 }
 0x121   :  { %1197 = vmatprep.subr.bf16.mxu1 %v1404_v0 }
 0x124   :  { %1198 = vmatpush3.bf16.msra.mxu1 %v1328_v4 }
 0x125   :  { %1199 = vmatprep.subr.bf16.mxu1 %v1404_v0 }
 0x128   :  { %1200 = vmatpush3.bf16.msra.mxu1 %v1329_v5 }
 0x129   :  { %1201 = vmatprep.subr.bf16.mxu1 %v1404_v0 }
 0x12c   :  { %1202 = vmatpush3.bf16.msra.mxu1 %v1330_v6 }
 0x12d   :  { %1227 = vmatprep.subr.bf16.mxu1 %v1404_v0 }
 0x1e2   :  { %v246_v37 = vpop.f32.mrb[0].mxu1 }
 0x1e3   :  { %v247_v38 = vadd.f32 %v999_v36, %v246_v37  ;;  %v1165_v39 = vpop.f32.mrb[1].mxu1 }
 0x1e4   :  { %v249_v40 = vpop.f32.mrb[2].mxu1  ;;  %v1336_v39 = vld [vmem:[#allocation2 + $0x158] sm:$0xff]  }
 0x1e5   :  { %v1488_v41 = vmax.f32 %v247_v38, 0.0  ;;  %v1166_v42 = vpop.f32.mrb[3].mxu1  ;;  %v1016_v38 = vld [vmem:[%s1571_s2 + $0x3] ss:$0 sm:$0xff] }
 0x1e7   :  { %v253_v43 = vpack.c.bf16 %v1488_v41, %v1488_v41 }
 0x1e9   :  { %1184 = vmatmul.mubr.bf16.vlgmr.msra.gmra.mrb[4].mxu0 %v253_v43  ;;  %v1338_v43 = vld [vmem:[#allocation2 + $0x178] sm:$0xff]  }
 0x1ea   :  { %1223 = vmatprep.mubr.msk.bf16.mxu0 %vm1405_vm0, %v1404_v0  ;;  %1208 = vmatpush3.bf16.msra.mxu0 %v1315_v44  ;;  %v1339_v44 = vld [vmem:[#allocation2 + $0x180] sm:$0xff]  }
 0x1eb   :  { %1209 = vmatprep.subr.bf16.mxu0 %v1404_v0 }
 0x1ee   :  { %1210 = vmatpush3.bf16.msra.mxu0 %v1316_v45  ;;  %v1340_v45 = vld [vmem:[#allocation2 + $0x188] sm:$0xff]  }
 0x1ef   :  { %1211 = vmatprep.subr.bf16.mxu0 %v1404_v0 }
 0x1f2   :  { %1212 = vmatpush3.bf16.msra.mxu0 %v1317_v46  ;;  %v1341_v46 = vld [vmem:[#allocation2 + $0x190] sm:$0xff]  }
 0x1f3   :  { %1213 = vmatprep.subr.bf16.mxu0 %v1404_v0 }
 0x1f6   :  { %1214 = vmatpush3.bf16.msra.mxu0 %v1318_v47  ;;  %v1342_v47 = vld [vmem:[#allocation2 + $0x198] sm:$0xff]  }
 0x1f7   :  { %1215 = vmatprep.subr.bf16.mxu0 %v1404_v0 }
 0x1fa   :  { %1216 = vmatpush3.bf16.msra.mxu0 %v1319_v48  ;;  %v1343_v48 = vld [vmem:[#allocation2 + $0x1a0] sm:$0xff]  }
 0x1fb   :  { %1217 = vmatprep.subr.bf16.mxu0 %v1404_v0 }
 0x1fe   :  { %1218 = vmatpush3.bf16.msra.mxu0 %v1320_v49  ;;  %v1344_v49 = vld [vmem:[#allocation2 + $0x1a8] sm:$0xff]  }
 0x1ff   :  { %1219 = vmatprep.subr.bf16.mxu0 %v1404_v0 }
 0x202   :  { %1220 = vmatpush3.bf16.msra.mxu0 %v1321_v50  ;;  %v1345_v50 = vld [vmem:[#allocation2 + $0x1b0] sm:$0xff]  }
 0x203   :  { %1221 = vmatprep.subr.bf16.mxu0 %v1404_v0 }
 0x206   :  { %1222 = vmatpush3.bf16.msra.mxu0 %v1322_v51  ;;  %v1346_v51 = vld [vmem:[#allocation2 + $0x1b8] sm:$0xff]  }
 0x207   :  { %1271 = vmatprep.subr.bf16.mxu0 %v1404_v0 }
 0x209   :  { %1224 = vmatmul.mubr.bf16.vlgmr.msra.gmra.mrb[8].mxu0 %v1460_v16 }
 0x20a   :  { %1279 = vmatprep.mubr.msk.bf16.mxu0 %vm1405_vm0, %v1404_v0  ;;  %1272 = vmatpush3.bf16.msra.mxu0 %v1345_v50 }
 0x20b   :  { %1273 = vmatprep.subr.bf16.mxu0 %v1404_v0 }
 0x20e   :  { %1274 = vmatpush3.bf16.msra.mxu0 %v1346_v51 }
 0x20f   :  { %1275 = vmatprep.subr.bf16.mxu0 %v1404_v0 }
 0x2bc   :  { %v357_v53 = vpop.f32.mrb[4].mxu0 }
 0x2bd   :  { %v358_v54 = vadd.f32 %v357_v53, %v273_v52  ;;  %v1185_v55 = vpop.f32.mrb[5].mxu0  ;;  %v1347_v52 = vld [vmem:[#allocation2 + $0x1c0] sm:$0xff]   ;;  %v1348_v53 = vld [vmem:[#allocation2 + $0x1c8] sm:$0xff]  }
 0x2be   :  { %v360_v56 = vpop.f32.mrb[6].mxu0  ;;  %1276 = vmatpush3.bf16.msra.mxu0 %v1347_v52 }
 0x2bf   :  { %363 = vmax.xlane.f32.xlu0 %v358_v54  ;;  %v1186_v57 = vpop.f32.mrb[7].mxu0  ;;  %1277 = vmatprep.subr.bf16.mxu0 %v1404_v0 }
 0x2c2   :  { %1278 = vmatpush3.bf16.msra.mxu0 %v1348_v53 }
 0x2dc   :  { %v587_v7 = vpop.f32.mrb[8].mxu0 }
 0x2dd   :  { %v1225_v8 = vpop.f32.mrb[9].mxu0  ;;  %v588_v18 = vadd.f32 %v1025_v14, %v587_v7  ;;  %v1053_v7 = vld [vmem:[%s1571_s2 + $0x7] ss:$0 sm:$0xff] }
 0x2de   :  { %v590_v9 = vpop.f32.mrb[10].mxu0 }
 0x2df   :  { %v1226_v10 = vpop.f32.mrb[11].mxu0  ;;  %v593_v21 = vmax.f32 %v588_v18, 0.0 }
 0x2e1   :  { %v594_v23 = vpack.c.bf16 %v593_v21, %v593_v21 }
 0x34c   :  { %v364_v62 = vpop.xlane.xlu0 %363 }
 0x34d   :  { %v365_v63 = vsub.f32 %v358_v54, %v364_v62 }
 0x34f   :  { %v366_v1 = vmul.f32 1.442695, %v365_v63  ;;  %v1052_v63 = vld [vmem:[%s1571_s2 + $0x6] ss:$0 sm:$0xff] }
 0x351   :  { %1349 = vpow2.f32 %v366_v1 }
 0x35b   :  { %v1350_v2 = vpop.eup %1349 }
 0x35c   :  { %368 = vadd.xlane.f32.xlu0 %v1350_v2 }
 0x3e9   :  { %v369_v11 = vpop.xlane.xlu0 %368 }
 0x3ea   :  { %1351 = vrcp.f32 %v369_v11 }
 0x3f4   :  { %v1352_v12 = vpop.eup %1351 }
 0x3f5   :  { %v371_v13 = vmul.f32 32.0, %v1352_v12 }
 0x3f7   :  { %v372_v15 = vmul.f32 %v1350_v2, %v371_v13 }
 0x3f9   :  { %v373_v17 = vmul.f32 %v372_v15, %v1488_v41  ;;  %v1337_v41 = vld [vmem:[#allocation2 + $0x170] sm:$0xff]  }
 0x3fb   :  { %v374_v20 = vpack.c.bf16 %v373_v17, %v373_v17 }
 0x3fd   :  { %1204 = vmatmul.mubr.bf16.vlgmr.msra.gmra.mrb[4].mxu1 %v374_v20 }
 0x3fe   :  { %1228 = vmatpush3.bf16.msra.mxu1 %v1331_v19  ;;  %1231 = vmatprep.mubr.msk.bf16.mxu1 %vm1405_vm0, %v1404_v0 }
 0x3ff   :  { %1229 = vmatprep.subr.bf16.mxu1 %v1404_v0 }
 0x402   :  { %1230 = vmatpush3.bf16.msra.mxu1 %v1332_v22 }
 0x403   :  { %1235 = vmatprep.subr.bf16.mxu1 %v1404_v0 }
 0x405   :  { %1232 = vmatmul.mubr.msk.bf16.vlgmr.msra.gmra.mrb[8].mxu1 %vm616_vm1, %v594_v23 }
 0x406   :  { %1239 = vmatprep.mubr.msk.bf16.mxu1 %vm1405_vm0, %v1404_v0  ;;  %1236 = vmatpush3.bf16.msra.mxu1 %v1333_v24 }
 0x407   :  { %1237 = vmatprep.subr.bf16.mxu1 %v1404_v0 }
 0x40a   :  { %1238 = vmatpush3.bf16.msra.mxu1 %v1334_v25 }
 0x40b   :  { %1243 = vmatprep.subr.bf16.mxu1 %v1404_v0 }
 0x4d0   :  { %v478_v26 = vpop.f32.mrb[4].mxu1 }
 0x4d1   :  { %v1205_v27 = vpop.f32.mrb[5].mxu1  ;;  %v479_v40 = vadd.f32 %v1016_v38, %v478_v26 }
 0x4d2   :  { %v481_v28 = vpop.f32.mrb[6].mxu1 }
 0x4d3   :  { %v1206_v29 = vpop.f32.mrb[7].mxu1  ;;  %v660_v42 = vpack.c.bf16 %v479_v40, %v479_v40 }
 0x4d8   :  { %v654_v31 = vpop.f32.mrb[8].mxu1 }
 0x4d9   :  { %v655_v32 = vadd.f32 %v1034_v30, %v654_v31  ;;  %v1233_v33 = vpop.f32.mrb[9].mxu1 }
 0x4da   :  { %v657_v34 = vpop.f32.mrb[10].mxu1 }
 0x4db   :  { %v665_v36 = vpack.c.bf16 %v655_v32, %v655_v32  ;;  %v1234_v37 = vpop.f32.mrb[11].mxu1 }
 0x4dd   :  { %1240 = vmatmul.mubr.msk.bf16.vlgmr.msra.gmra.mrb[12].mxu1 %vm616_vm1, %v665_v36 }
 0x4de   :  { %1244 = vmatpush3.bf16.msra.mxu1 %v1335_v35  ;;  %1247 = vmatprep.mubr.msk.bf16.mxu1 %vm1405_vm0, %v1404_v0 }
 0x4df   :  { %1245 = vmatprep.subr.bf16.mxu1 %v1404_v0 }
 0x4e2   :  { %1246 = vmatpush3.bf16.msra.mxu1 %v1336_v39 }
 0x4e3   :  { %1251 = vmatprep.subr.bf16.mxu1 %v1404_v0 }
 0x4e5   :  { %1248 = vmatmul.mubr.msk.bf16.vlgmr.msra.gmra.mrb[16].mxu1 %vm616_vm1, %v660_v42 }
 0x4e6   :  { %1252 = vmatpush3.bf16.msra.mxu1 %v1337_v41  ;;  %1267 = vmatprep.mubr.msk.bf16.mxu1 %vm1405_vm0, %v1404_v0 }
 0x4e7   :  { %1253 = vmatprep.subr.bf16.mxu1 %v1404_v0 }
 0x4ea   :  { %1254 = vmatpush3.bf16.msra.mxu1 %v1338_v43 }
 0x4eb   :  { %1255 = vmatprep.subr.bf16.mxu1 %v1404_v0 }
 0x4ee   :  { %1256 = vmatpush3.bf16.msra.mxu1 %v1339_v44 }
 0x4ef   :  { %1257 = vmatprep.subr.bf16.mxu1 %v1404_v0 }
 0x4f2   :  { %1258 = vmatpush3.bf16.msra.mxu1 %v1340_v45 }
 0x4f3   :  { %1259 = vmatprep.subr.bf16.mxu1 %v1404_v0 }
 0x4f6   :  { %1260 = vmatpush3.bf16.msra.mxu1 %v1341_v46 }
 0x4f7   :  { %1261 = vmatprep.subr.bf16.mxu1 %v1404_v0 }
 0x4fa   :  { %1262 = vmatpush3.bf16.msra.mxu1 %v1342_v47 }
 0x4fb   :  { %1263 = vmatprep.subr.bf16.mxu1 %v1404_v0 }
 0x4fe   :  { %1264 = vmatpush3.bf16.msra.mxu1 %v1343_v48 }
 0x4ff   :  { %1265 = vmatprep.subr.bf16.mxu1 %v1404_v0 }
 0x502   :  { %1266 = vmatpush3.bf16.msra.mxu1 %v1344_v49 }
 0x505   :  { %1268 = vmatmul.mubr.bf16.vlgmr.msra.gmra.mrb[20].mxu1 %v1460_v16 }
 0x5b0   :  { %v719_v54 = vpop.f32.mrb[12].mxu1 }
 0x5b1   :  { %v1241_v55 = vpop.f32.mrb[13].mxu1 }
 0x5b2   :  { %v722_v56 = vpop.f32.mrb[14].mxu1 }
 0x5b3   :  { %v1242_v57 = vpop.f32.mrb[15].mxu1 }
 0x5b8   :  { %v774_v58 = vpop.f32.mrb[16].mxu1 }
 0x5b9   :  { %v775_v16 = vadd.f32 %v774_v58, %v719_v54  ;;  %v1249_v59 = vpop.f32.mrb[17].mxu1 }
 0x5ba   :  { %v777_v60 = vpop.f32.mrb[18].mxu1 }
 0x5bb   :  { %v1250_v61 = vpop.f32.mrb[19].mxu1 }
 0x5d8   :  { %v878_v62 = vpop.f32.mrb[20].mxu1 }
 0x5d9   :  { %v884_v1 = vadd.f32 %v878_v62, %v775_v16  ;;  %v1269_v2 = vpop.f32.mrb[21].mxu1 }
 0x5da   :  { %v881_v3 = vpop.f32.mrb[22].mxu1 }
 0x5db   :  { %v890_v0 = vadd.f32 %v1052_v63, %v884_v1  ;;  %v1270_v4 = vpop.f32.mrb[23].mxu1 }
 0x5dd   :  { %v891_v5 = vmax.f32 %v890_v0, 0.0 }
 0x5df   :  { %v892_v6 = vpack.c.bf16 %v891_v5, %v891_v5 }
 0x5e1   :  { %1280 = vmatmul.mubr.msk.bf16.vlgmr.msra.gmra.mrb[12].mxu0 %vm930_vm2, %v892_v6 }
 0x6b4   :  { %v968_v8 = vpop.f32.mrb[12].mxu0 }
 0x6b5   :  { %v969_v9 = vadd.f32 %v1053_v7, %v968_v8  ;;  %v1281_v10 = vpop.f32.mrb[13].mxu0 }
 0x6b6   :  { %v971_v11 = vpop.f32.mrb[14].mxu0 }
 0x6b7   :  { %974 = vst [vmem:[#allocation5] sm:$0xff] %v969_v9  ;;  %v1282_v12 = vpop.f32.mrb[15].mxu0 }
 0x6b8   :  { %1386 = shalt.err (!%p1383_p12)
}
 0x6b9   :  { %s1387_s2 = scalar_lea.hbm %s1572_s3, 128 }
 0x6ba   :  { %p1388_p13 = scmp.ne.s32.totalorder %s1572_s3, %s1387_s2  ;;  %p1391_p0 = scmp.lt.u32.totalorder %s1387_s2, %s1572_s3 }
 0x6bc   :  { %p1393_p1 = pnand %p1391_p0, %p1388_p13 }
 0x6be   :  { %1396 = shalt.err (!%p1393_p1)
}
 0x6bf   :  { %984 = dma.vmem_to_hbm [thread:$0]  %s982_s17, 128, %s1572_s3, [#allocation4]  }
 0x6c0   :  { %1399 = dma.done.wait [#allocation4], 128  }
 0x6c1   :  { %1400 = vsyncadd [#allocation4], 4294967168 }
 0x6c2   :  { %988 = vsyncpa [#allocation3], 1 }
 0x6c3   :  { %989 = vsyncpa [#allocation4], 1 }

</bundles_post_ra>
